<compile_context>
chip_gen: v7x
topology: tpu7x:2x2x1
jax: 0.10.0
libtpu: 0.0.40
codegen_flags: <defaults>
</compile_context>

<pallas_src>
import jax
import jax.numpy as jnp
from jax.experimental import pallas as pl
from jax.experimental.pallas import tpu as pltpu

NEG_SLOPE = 0.01   # F.leaky_relu default
EPS = 1e-12        # F.normalize default eps


# ----------------------------- Pallas kernels -----------------------------

def mlp_kernel(feat_ref, w1_ref, b1_ref, w2_ref, b2_ref, out_ref):
    # temp = leaky_relu(feat @ W1 + b1) @ W2 + b2   (tiny; one grid point)
    f = feat_ref[...]
    h = jnp.dot(f, w1_ref[...], preferred_element_type=jnp.float32) + b1_ref[...]
    h = jnp.where(h > 0, h, NEG_SLOPE * h)
    out = jnp.dot(h, w2_ref[...], preferred_element_type=jnp.float32) + b2_ref[...]
    out_ref[...] = out.astype(out_ref.dtype)


def normalize_kernel(x_ref, xn_ref, xb_ref):
    # row-wise L2 normalize: x * rsqrt(max(||x||^2, eps^2))  (rsqrt -> EUP slot)
    x = x_ref[...]
    ss = jnp.sum(x * x, axis=-1, keepdims=True)
    inv = jax.lax.rsqrt(jnp.maximum(ss, EPS * EPS))
    xn = x * inv
    xn_ref[...] = xn                                 # f32 copy (residual path)
    xb_ref[...] = xn.astype(jnp.bfloat16)            # bf16 copy (MXU operand)


def spmm_kernel(a_ref, x_ref, h_ref, hb_ref, acc_ref):
    # hop 1: h = A @ x, tiled over (row tile i, reduction tile k)
    k = pl.program_id(1)

    @pl.when(k == 0)
    def _():
        acc_ref[...] = jnp.zeros_like(acc_ref)

    acc_ref[...] += jnp.dot(a_ref[...], x_ref[...],
                            preferred_element_type=jnp.float32)

    @pl.when(k == pl.num_programs(1) - 1)
    def _():
        h_ref[...] = acc_ref[...]                    # f32 (for residual)
        hb_ref[...] = acc_ref[...].astype(jnp.bfloat16)   # bf16 (hop-2 operand)


def spmm_residual_kernel(a_ref, hb_ref, x_ref, h_ref, out_ref, acc_ref):
    # hop 2 + fused residual: out = x + h + A @ h
    k = pl.program_id(1)

    @pl.when(k == 0)
    def _():
        acc_ref[...] = jnp.zeros_like(acc_ref)

    acc_ref[...] += jnp.dot(a_ref[...], hb_ref[...],
                            preferred_element_type=jnp.float32)

    @pl.when(k == pl.num_programs(1) - 1)
    def _():
        out_ref[...] = (x_ref[...] + h_ref[...] + acc_ref[...]).astype(out_ref.dtype)


# ------------------------------ wrappers ----------------------------------

def _pick_tile(n, target):
    # use the target tile if it evenly divides n, otherwise fall back to the
    # full dimension (always legal per the "block == full dim" rule).
    return target if (n % target == 0) else n


def _full_spec(shape):
    return pl.BlockSpec(shape, lambda i: tuple(0 for _ in shape))


def run_mlp(features, w1, b1, w2, b2):
    # Tiny matmuls: dominated by call overhead, not MXU throughput; kept as a
    # single-grid-point kernel.
    n = features.shape[0]
    d_out = w2.shape[1]
    return pl.pallas_call(
        mlp_kernel,
        out_shape=jax.ShapeDtypeStruct((n, d_out), jnp.float32),
        grid=(1,),
        in_specs=[_full_spec(features.shape), _full_spec(w1.shape),
                  _full_spec(b1.shape), _full_spec(w2.shape),
                  _full_spec(b2.shape)],
        out_specs=_full_spec((n, d_out)),
        compiler_params=pltpu.CompilerParams(
            dimension_semantics=("arbitrary",)),
    )(features, w1, b1, w2, b2)


def run_normalize(x, tm=128):
    n, d = x.shape
    tm = _pick_tile(n, tm)
    spec = pl.BlockSpec((tm, d), lambda i: (i, 0))
    return pl.pallas_call(
        normalize_kernel,
        out_shape=(jax.ShapeDtypeStruct((n, d), jnp.float32),
                   jax.ShapeDtypeStruct((n, d), jnp.bfloat16)),
        grid=(n // tm,),
        in_specs=[spec],
        out_specs=(spec, spec),
        compiler_params=pltpu.CompilerParams(
            dimension_semantics=("parallel",)),
    )(x)


def run_spmm(a_bf16, x_bf16, tm=128, tk=128):
    # h = A @ x, tiled.  Row axis "parallel" (megacore on v7x), K axis last
    # and "arbitrary" (reduction with resident accumulator).
    n = a_bf16.shape[0]
    d = x_bf16.shape[1]
    tm = _pick_tile(n, tm)
    tk = _pick_tile(n, tk)
    h_spec = pl.BlockSpec((tm, d), lambda i, k: (i, 0))
    return pl.pallas_call(
        spmm_kernel,
        out_shape=(jax.ShapeDtypeStruct((n, d), jnp.float32),
                   jax.ShapeDtypeStruct((n, d), jnp.bfloat16)),
        grid=(n // tm, n // tk),
        in_specs=[pl.BlockSpec((tm, tk), lambda i, k: (i, k)),
                  pl.BlockSpec((tk, d), lambda i, k: (k, 0))],
        out_specs=(h_spec, h_spec),
        scratch_shapes=[pltpu.VMEM((tm, d), jnp.float32)],
        compiler_params=pltpu.CompilerParams(
            dimension_semantics=("parallel", "arbitrary")),
    )(a_bf16, x_bf16)


def run_spmm_residual(a_bf16, h_bf16, x_f32, h_f32, tm=128, tk=128):
    # out = x + h + A @ h, residual fused into the last-K epilogue.
    n = a_bf16.shape[0]
    d = x_f32.shape[1]
    tm = _pick_tile(n, tm)
    tk = _pick_tile(n, tk)
    return pl.pallas_call(
        spmm_residual_kernel,
        out_shape=jax.ShapeDtypeStruct((n, d), jnp.float32),
        grid=(n // tm, n // tk),
        in_specs=[pl.BlockSpec((tm, tk), lambda i, k: (i, k)),
                  pl.BlockSpec((tk, d), lambda i, k: (k, 0)),
                  pl.BlockSpec((tm, d), lambda i, k: (i, 0)),
                  pl.BlockSpec((tm, d), lambda i, k: (i, 0))],
        out_specs=pl.BlockSpec((tm, d), lambda i, k: (i, 0)),
        scratch_shapes=[pltpu.VMEM((tm, d), jnp.float32)],
        compiler_params=pltpu.CompilerParams(
            dimension_semantics=("parallel", "arbitrary")),
    )(a_bf16, h_bf16, x_f32, h_f32)


# --------------------------- plain-JAX glue --------------------------------

def build_norm_adj(edge_index, num_nodes, dtype=jnp.bfloat16):
    """Dense normalized adjacency matching Base_gcn.message (aggr='add').

    out[i] = sum_{edges e: col_e == i} deg(row_e)^-0.5 * deg(col_e)^-0.5 * x[row_e]
    Self loops removed (size=None path in Base_gcn.forward).
    Zero-degree nodes get deg_inv_sqrt = 0 (avoids inf/NaN scatter).
    """
    row, col = edge_index[0], edge_index[1]
    keep = (row != col).astype(jnp.float32)           # remove_self_loops
    deg = jnp.zeros((num_nodes,), jnp.float32).at[row].add(keep)
    deg_inv_sqrt = jnp.where(deg > 0,
                             jax.lax.rsqrt(jnp.maximum(deg, 1e-30)),
                             0.0)
    norm = deg_inv_sqrt[row] * deg_inv_sqrt[col] * keep
    a = jnp.zeros((num_nodes, num_nodes), jnp.float32).at[col, row].add(norm)
    return a.astype(dtype)


def gcn_forward(edge_index, features, preference, w1, b1, w2, b2):
    # MLP hot path (Pallas)
    temp_features = run_mlp(features, w1, b1, w2, b2)
    # concat users||items (glue)
    x_raw = jnp.concatenate([preference, temp_features], axis=0)
    n = x_raw.shape[0]
    # normalized adjacency (glue), stored bf16 — halves the mem-bound A traffic
    a_bf16 = build_norm_adj(edge_index, n, dtype=jnp.bfloat16)
    # row-wise L2 normalize (Pallas, rsqrt)
    x_f32, x_bf16 = run_normalize(x_raw)
    # two tiled propagation hops; residual fused into hop 2 (Pallas)
    h_f32, h_bf16 = run_spmm(a_bf16, x_bf16)
    x_hat = run_spmm_residual(a_bf16, h_bf16, x_f32, h_f32)
    return x_hat, preference


# --------------------------------- main ------------------------------------

if __name__ == "__main__":
    num_user, num_item = 64, 192
    dim_feat, dim_E = 32, 16
    N = num_user + num_item                     # 256 -> exercises a 2x2 tiled grid

    key = jax.random.PRNGKey(0)
    k_pref, k_feat, k_w1, k_b1, k_w2, k_b2 = jax.random.split(key, 6)

    # nn.Parameter xavier_normal_(gain=1): std = sqrt(2 / (fan_in + fan_out))
    pref_std = (2.0 / (num_user + dim_E)) ** 0.5
    preference = pref_std * jax.random.normal(k_pref, (num_user, dim_E), jnp.float32)

    # item content features
    features = jax.random.normal(k_feat, (num_item, dim_feat), jnp.float32)

    # MLP: Linear(dim_feat, 4*dim_E) ; MLP_1: Linear(4*dim_E, dim_E)
    # stored as (in, out) so kernel computes x @ W + b (== torch x @ W.T + b)
    w1 = 0.1 * jax.random.normal(k_w1, (dim_feat, 4 * dim_E), jnp.float32)
    b1 = 0.1 * jax.random.normal(k_b1, (1, 4 * dim_E), jnp.float32)
    w2 = 0.1 * jax.random.normal(k_w2, (4 * dim_E, dim_E), jnp.float32)
    b2 = 0.1 * jax.random.normal(k_b2, (1, dim_E), jnp.float32)

    # bipartite user-item graph, both edge directions, no self loops, every node
    # has degree >= 1 (like MENTOR data)
    src, dst = [], []
    for u in range(num_user):
        for t in (u % num_item, (u * 7 + 3) % num_item):
            i_node = num_user + t
            src += [u, i_node]
            dst += [i_node, u]
    for it in range(num_item):
        u = it % num_user
        i_node = num_user + it
        src += [u, i_node]
        dst += [i_node, u]
    edge_index = jnp.array([src, dst], dtype=jnp.int32)   # (2, E)

    x_hat, pref_out = gcn_forward(edge_index, features, preference,
                                  w1, b1, w2, b2)
    x_hat = jax.block_until_ready(x_hat)

    # pure-JAX f32 reference check (bf16 A/operands in the kernel -> loose tol)
    def reference():
        t = features @ w1 + b1
        t = jnp.where(t > 0, t, NEG_SLOPE * t)
        t = t @ w2 + b2
        x = jnp.concatenate([preference, t], axis=0)
        x = x / jnp.maximum(jnp.linalg.norm(x, axis=1, keepdims=True), EPS)
        a = build_norm_adj(edge_index, N, dtype=jnp.float32)
        h = a @ x
        h1 = a @ h
        return x + h + h1

    ref = reference()
    assert x_hat.shape == (N, dim_E)
    assert pref_out.shape == (num_user, dim_E)
    assert not bool(jnp.any(jnp.isnan(x_hat)))
    assert jnp.allclose(x_hat, ref, atol=3e-2, rtol=3e-2)

    print("KERNEL_OK")
</pallas_src>

<mosaic_0001>
module attributes {stable_mosaic.version = 11 : i64} {
  func.func @mlp_kernel(%arg0: i32, %arg1: memref<192x32xf32, #tpu.memory_space<vmem>>, %arg2: memref<32x64xf32, #tpu.memory_space<vmem>>, %arg3: memref<1x64xf32, #tpu.memory_space<vmem>>, %arg4: memref<64x16xf32, #tpu.memory_space<vmem>>, %arg5: memref<1x16xf32, #tpu.memory_space<vmem>>, %arg6: memref<192x16xf32, #tpu.memory_space<vmem>>) attributes {dimension_semantics = [#tpu.dimension_semantics<arbitrary>], iteration_bounds = array<i64: 1>, scalar_prefetch = 0 : i64, scratch_operands = 0 : i64, tpu.core_type = #tpu.core_type<tc>, window_params = [{pipeline_mode = #tpu.pipeline_mode<synchronous>, transform_indices = @transform_0, window_bounds = array<i64: 192, 32>}, {pipeline_mode = #tpu.pipeline_mode<synchronous>, transform_indices = @transform_1, window_bounds = array<i64: 32, 64>}, {pipeline_mode = #tpu.pipeline_mode<synchronous>, transform_indices = @transform_2, window_bounds = array<i64: 1, 64>}, {pipeline_mode = #tpu.pipeline_mode<synchronous>, transform_indices = @transform_3, window_bounds = array<i64: 64, 16>}, {pipeline_mode = #tpu.pipeline_mode<synchronous>, transform_indices = @transform_4, window_bounds = array<i64: 1, 16>}, {pipeline_mode = #tpu.pipeline_mode<synchronous>, transform_indices = @transform_5, window_bounds = array<i64: 192, 16>}]} {
    %c0 = arith.constant 0 : index
    %c0_0 = arith.constant 0 : index
    %0 = vector.load %arg1[%c0, %c0_0] : memref<192x32xf32, #tpu.memory_space<vmem>>, vector<192x32xf32>
    %c0_1 = arith.constant 0 : index
    %c0_2 = arith.constant 0 : index
    %1 = vector.load %arg2[%c0_1, %c0_2] : memref<32x64xf32, #tpu.memory_space<vmem>>, vector<32x64xf32>
    %cst = arith.constant dense<0.000000e+00> : vector<192x64xf32>
    %2 = tpu.matmul %0, %1, %cst {dimension_numbers = #tpu.dot_dimension_numbers<[1], [0], [0], [1], [0, 0, 1, 1], [], []>} : vector<192x32xf32>, vector<32x64xf32>, vector<192x64xf32> -> vector<192x64xf32>
    %c0_3 = arith.constant 0 : index
    %c0_4 = arith.constant 0 : index
    %3 = vector.load %arg3[%c0_3, %c0_4] : memref<1x64xf32, #tpu.memory_space<vmem>>, vector<1x64xf32>
    %4 = vector.broadcast %3 : vector<1x64xf32> to vector<192x64xf32>
    %5 = arith.addf %2, %4 : vector<192x64xf32>
    %cst_5 = arith.constant 0.000000e+00 : f32
    %6 = vector.broadcast %cst_5 : f32 to vector<192x64xf32>
    %7 = arith.cmpf ogt, %5, %6 : vector<192x64xf32>
    %cst_6 = arith.constant 0.00999999977 : f32
    %8 = vector.broadcast %cst_6 : f32 to vector<192x64xf32>
    %9 = arith.mulf %8, %5 : vector<192x64xf32>
    %10 = arith.select %7, %5, %9 : vector<192x64xi1>, vector<192x64xf32>
    %c0_7 = arith.constant 0 : index
    %c0_8 = arith.constant 0 : index
    %11 = vector.load %arg4[%c0_7, %c0_8] : memref<64x16xf32, #tpu.memory_space<vmem>>, vector<64x16xf32>
    %cst_9 = arith.constant dense<0.000000e+00> : vector<192x16xf32>
    %12 = tpu.matmul %10, %11, %cst_9 {dimension_numbers = #tpu.dot_dimension_numbers<[1], [0], [0], [1], [0, 0, 1, 1], [], []>} : vector<192x64xf32>, vector<64x16xf32>, vector<192x16xf32> -> vector<192x16xf32>
    %c0_10 = arith.constant 0 : index
    %c0_11 = arith.constant 0 : index
    %13 = vector.load %arg5[%c0_10, %c0_11] : memref<1x16xf32, #tpu.memory_space<vmem>>, vector<1x16xf32>
    %14 = vector.broadcast %13 : vector<1x16xf32> to vector<192x16xf32>
    %15 = arith.addf %12, %14 : vector<192x16xf32>
    %c0_12 = arith.constant 0 : index
    %c0_13 = arith.constant 0 : index
    %16 = vector.load %arg6[%c0_12, %c0_13] : memref<192x16xf32, #tpu.memory_space<vmem>>, vector<192x16xf32>
    tpu.vector_store %arg6[%c0_12, %c0_13], %15 {strides = array<i32>} : memref<192x16xf32, #tpu.memory_space<vmem>>, vector<192x16xf32>,
    return
  }
  func.func @transform_0(%arg0: i32) -> (i32, i32) {
    %c0_i32 = arith.constant 0 : i32
    %c0_i32_0 = arith.constant 0 : i32
    %c0_i32_1 = arith.constant 0 : i32
    return %c0_i32, %c0_i32_0 : i32, i32
  }
  func.func @transform_1(%arg0: i32) -> (i32, i32) {
    %c0_i32 = arith.constant 0 : i32
    %c0_i32_0 = arith.constant 0 : i32
    %c0_i32_1 = arith.constant 0 : i32
    return %c0_i32, %c0_i32_0 : i32, i32
  }
  func.func @transform_2(%arg0: i32) -> (i32, i32) {
    %c0_i32 = arith.constant 0 : i32
    %c0_i32_0 = arith.constant 0 : i32
    %c0_i32_1 = arith.constant 0 : i32
    return %c0_i32, %c0_i32_0 : i32, i32
  }
  func.func @transform_3(%arg0: i32) -> (i32, i32) {
    %c0_i32 = arith.constant 0 : i32
    %c0_i32_0 = arith.constant 0 : i32
    %c0_i32_1 = arith.constant 0 : i32
    return %c0_i32, %c0_i32_0 : i32, i32
  }
  func.func @transform_4(%arg0: i32) -> (i32, i32) {
    %c0_i32 = arith.constant 0 : i32
    %c0_i32_0 = arith.constant 0 : i32
    %c0_i32_1 = arith.constant 0 : i32
    return %c0_i32, %c0_i32_0 : i32, i32
  }
  func.func @transform_5(%arg0: i32) -> (i32, i32) {
    %c0_i32 = arith.constant 0 : i32
    %c0_i32_0 = arith.constant 0 : i32
    %c0_i32_1 = arith.constant 0 : i32
    return %c0_i32, %c0_i32_0 : i32, i32
  }
}

</mosaic_0001>

<bundles_post_ra>
// kernel: tpu_custom_call.1
= control target key start
LH: loop header
LB: loop body
LE: loop exit
PB: predicated region body
PF: predicated region fallthrough
CT: control target
= control target key end

     0   :  { %vm55_vm0 = vcmask 261120   ;;  %vm400_vm3 = vcmask 523264   ;;  %s1265_s1 = inlined_call_operand.vmem [shape: f32[32,64], index: 1, kind: input, shape index: {}]   ;;  %s1266_s0 = inlined_call_operand.vmem [shape: f32[192,32], index: 0, kind: input, shape index: {}]   ;;  %s1267_s3 = inlined_call_operand.vmem [shape: f32[64,16], index: 3, kind: input, shape index: {}]   ;;  %s1268_s2 = inlined_call_operand.vmem [shape: f32[1,64], index: 2, kind: input, shape index: {}]   ;;  %s1269_s4 = inlined_call_operand.vmem [shape: f32[1,16], index: 4, kind: input, shape index: {}]   ;;  %s1270_s5 = inlined_call_operand.vmem [shape: f32[192,16], index: 5, kind: output, shape index: {}]  }
   0x1   :  { %v44_v0 = vld [vmem:[%s1265_s1] sm:$0xff]  ;;  %v45_v1 = vld [vmem:[%s1265_s1 + $0x8] sm:$0xff]  ;;  %v46_v2 = vld [vmem:[%s1265_s1 + $0x10] sm:$0xff] }
   0x2   :  { %v893_v3 = vpack.c.bf16 %v45_v1, %v44_v0  ;;  %v47_v4 = vld [vmem:[%s1265_s1 + $0x18] sm:$0xff]  ;;  %v20_v5 = vld [vmem:[%s1266_s0] sm:$0xff]  ;;  %v21_v7 = vld [vmem:[%s1266_s0 + $0x8] sm:$0xff] }
   0x3   :  { %v897_v6 = vpack.c.bf16 %v47_v4, %v46_v2  ;;  %805 = vmatprep.mubr.msk.f32.mxu0 %vm55_vm0, %v20_v5  ;;  %v22_v8 = vld [vmem:[%s1266_s0 + $0x10] sm:$0xff]  ;;  %v385_v9 = vld [vmem:[%s1267_s3] sm:$0xff]  ;;  %v386_v10 = vld [vmem:[%s1267_s3 + $0x8] sm:$0xff] }
   0x4   :  { %894 = vmatprep.subr.bf16.mxu0 %v893_v3  ;;  %v901_v11 = vpack.c.bf16 %v386_v10, %v385_v9  ;;  %v387_v12 = vld [vmem:[%s1267_s3 + $0x10] sm:$0xff]  ;;  %v388_v13 = vld [vmem:[%s1267_s3 + $0x18] sm:$0xff]  ;;  %v24_v16 = vld [vmem:[%s1266_s0 + $0x20] sm:$0xff] }
   0x5   :  { %896 = vmatpush3.bf16.msra.mxu0 %v893_v3  ;;  %v905_v14 = vpack.c.bf16 %v388_v13, %v387_v12  ;;  %v23_v15 = vld [vmem:[%s1266_s0 + $0x18] sm:$0xff]  ;;  %v25_v17 = vld [vmem:[%s1266_s0 + $0x28] sm:$0xff]  ;;  %v26_v18 = vld [vmem:[%s1266_s0 + $0x30] sm:$0xff] }
   0x6   :  { %898 = vmatprep.subr.bf16.mxu0 %v897_v6  ;;  %917 = vmatprep.subr.bf16.mxu1 %v901_v11  ;;  %v27_v19 = vld [vmem:[%s1266_s0 + $0x38] sm:$0xff]  ;;  %v28_v20 = vld [vmem:[%s1266_s0 + $0x40] sm:$0xff]  ;;  %v29_v21 = vld [vmem:[%s1266_s0 + $0x48] sm:$0xff] }
   0x7   :  { %921 = vmatpush3.bf16.msra.mxu1 %v901_v11  ;;  %v30_v22 = vld [vmem:[%s1266_s0 + $0x50] sm:$0xff]  ;;  %v31_v23 = vld [vmem:[%s1266_s0 + $0x58] sm:$0xff]  ;;  %v32_v24 = vld [vmem:[%s1266_s0 + $0x60] sm:$0xff] }
   0x8   :  { %918 = vmatprep.subr.bf16.mxu1 %v905_v14  ;;  %v33_v25 = vld [vmem:[%s1266_s0 + $0x68] sm:$0xff]  ;;  %v34_v26 = vld [vmem:[%s1266_s0 + $0x70] sm:$0xff]  ;;  %v35_v27 = vld [vmem:[%s1266_s0 + $0x78] sm:$0xff] }
   0x9   :  { %900 = vmatpush3.bf16.msra.mxu0 %v897_v6  ;;  %v36_v28 = vld [vmem:[%s1266_s0 + $0x80] sm:$0xff]  ;;  %v37_v29 = vld [vmem:[%s1266_s0 + $0x88] sm:$0xff]  ;;  %v38_v30 = vld [vmem:[%s1266_s0 + $0x90] sm:$0xff] }
   0xa   :  { %902 = vmatprep.subr.bf16.mxu0 %v901_v11  ;;  %v39_v31 = vld [vmem:[%s1266_s0 + $0x98] sm:$0xff]  ;;  %v40_v32 = vld [vmem:[%s1266_s0 + $0xa0] sm:$0xff]  ;;  %v41_v33 = vld [vmem:[%s1266_s0 + $0xa8] sm:$0xff] }
   0xb   :  { %922 = vmatpush3.bf16.msra.mxu1 %v905_v14  ;;  %v42_v34 = vld [vmem:[%s1266_s0 + $0xb0] sm:$0xff]  ;;  %v43_v35 = vld [vmem:[%s1266_s0 + $0xb8] sm:$0xff]  ;;  %v389_v36 = vld [vmem:[%s1267_s3 + $0x20] sm:$0xff] }
   0xc   :  { %806 = vmatmul.mubr.msk.f32.vlgmr.msra.gmra.mrb[0].mxu0 %vm55_vm0, %v21_v7  ;;  %v390_v37 = vld [vmem:[%s1267_s3 + $0x28] sm:$0xff]  ;;  %v391_v39 = vld [vmem:[%s1267_s3 + $0x30] sm:$0xff]  ;;  %v392_v40 = vld [vmem:[%s1267_s3 + $0x38] sm:$0xff] }
   0xd   :  { %808 = vmatprep.mubr.msk.f32.mxu0 %vm55_vm0, %v22_v8  ;;  %904 = vmatpush3.bf16.msra.mxu0 %v901_v11  ;;  %v909_v38 = vpack.c.bf16 %v390_v37, %v389_v36  ;;  %v913_v41 = vpack.c.bf16 %v392_v40, %v391_v39  ;;  %v1090_v42 = vld [vmem:[%s1268_s2] ss:$0 sm:$0xff] }
   0xe   :  { %906 = vmatprep.subr.bf16.mxu0 %v905_v14 }
   0xf   :  { %919 = vmatprep.subr.bf16.mxu1 %v909_v38 }
  0x10   :  { %809 = vmatmul.mubr.msk.f32.gmra.mrb[2].mxu0 %vm55_vm0, %v23_v15  ;;  %923 = vmatpush3.bf16.msra.mxu1 %v909_v38 }
  0x11   :  { %811 = vmatprep.mubr.msk.f32.mxu0 %vm55_vm0, %v24_v16  ;;  %908 = vmatpush3.bf16.msra.mxu0 %v905_v14 }
  0x12   :  { %910 = vmatprep.subr.bf16.mxu0 %v909_v38  ;;  %920 = vmatprep.subr.bf16.mxu1 %v913_v41 }
  0x14   :  { %812 = vmatmul.mubr.msk.f32.gmra.mrb[4].mxu0 %vm55_vm0, %v25_v17  ;;  %924 = vmatpush3.bf16.msra.mxu1 %v913_v41 }
  0x15   :  { %814 = vmatprep.mubr.msk.f32.mxu0 %vm55_vm0, %v26_v18  ;;  %912 = vmatpush3.bf16.msra.mxu0 %v909_v38 }
  0x16   :  { %914 = vmatprep.subr.bf16.mxu0 %v913_v41 }
  0x18   :  { %815 = vmatmul.mubr.msk.f32.gmra.mrb[6].mxu0 %vm55_vm0, %v27_v19 }
  0x19   :  { %817 = vmatprep.mubr.msk.f32.mxu0 %vm55_vm0, %v28_v20  ;;  %916 = vmatpush3.bf16.msra.mxu0 %v913_v41 }
  0x1c   :  { %818 = vmatmul.mubr.msk.f32.gmra.mrb[8].mxu0 %vm55_vm0, %v29_v21 }
  0x1d   :  { %820 = vmatprep.mubr.msk.f32.mxu0 %vm55_vm0, %v30_v22 }
  0x20   :  { %821 = vmatmul.mubr.msk.f32.gmra.mrb[10].mxu0 %vm55_vm0, %v31_v23 }
  0x21   :  { %823 = vmatprep.mubr.msk.f32.mxu0 %vm55_vm0, %v32_v24 }
  0x24   :  { %824 = vmatmul.mubr.msk.f32.gmra.mrb[12].mxu0 %vm55_vm0, %v33_v25 }
  0x25   :  { %826 = vmatprep.mubr.msk.f32.mxu0 %vm55_vm0, %v34_v26 }
  0x28   :  { %827 = vmatmul.mubr.msk.f32.gmra.mrb[14].mxu0 %vm55_vm0, %v35_v27 }
  0x29   :  { %829 = vmatprep.mubr.msk.f32.mxu0 %vm55_vm0, %v36_v28 }
  0x2c   :  { %830 = vmatmul.mubr.msk.f32.gmra.mrb[16].mxu0 %vm55_vm0, %v37_v29 }
  0x2d   :  { %832 = vmatprep.mubr.msk.f32.mxu0 %vm55_vm0, %v38_v30 }
  0x30   :  { %833 = vmatmul.mubr.msk.f32.gmra.mrb[18].mxu0 %vm55_vm0, %v39_v31 }
  0x31   :  { %835 = vmatprep.mubr.msk.f32.mxu0 %vm55_vm0, %v40_v32 }
  0x34   :  { %836 = vmatmul.mubr.msk.f32.gmra.mrb[20].mxu0 %vm55_vm0, %v41_v33 }
  0x35   :  { %838 = vmatprep.mubr.msk.f32.mxu0 %vm55_vm0, %v42_v34 }
  0x38   :  { %839 = vmatmul.mubr.msk.f32.gmra.mrb[22].mxu0 %vm55_vm0, %v43_v35 }
  0xdf   :  { %v807_v43 = vpop.f32.mrb[0].mxu0 }
  0xe0   :  { %v200_v44 = vadd.f32 %v807_v43, %v1090_v42  ;;  %v194_v45 = vpop.f32.mrb[1].mxu0 }
  0xe1   :  { %v195_v46 = vadd.f32 %v1090_v42, %v194_v45 }
  0xe2   :  { %v338_v47 = vmul.f32 0.01, %v200_v44  ;;  %vm314_vm1 = vcmp.gt.f32.partialorder %v200_v44, 0.0 }
  0xe3   :  { %vm313_vm2 = vcmp.gt.f32.partialorder %v195_v46, 0.0  ;;  %v337_v48 = vmul.f32 0.01, %v195_v46  ;;  %v810_v49 = vpop.f32.mrb[2].mxu0 }
  0xe4   :  { %v210_v50 = vadd.f32 %v810_v49, %v1090_v42  ;;  %v204_v51 = vpop.f32.mrb[3].mxu0  ;;  %v362_v54 = vsel %vm314_vm1, %v200_v44, %v338_v47 }
  0xe5   :  { %v205_v52 = vadd.f32 %v1090_v42, %v204_v51  ;;  %v361_v53 = vsel %vm313_vm2, %v195_v46, %v337_v48 }
  0xe6   :  { %v340_v55 = vmul.f32 0.01, %v210_v50  ;;  %857 = vmatprep.mubr.msk.f32.mxu0 %vm400_vm3, %v361_v53  ;;  %vm316_vm4 = vcmp.gt.f32.partialorder %v210_v50, 0.0 }
  0xe7   :  { %v813_v56 = vpop.f32.mrb[4].mxu0  ;;  %858 = vmatmul.mubr.msk.f32.vlgmr.msra.gmra.mrb[24].mxu0 %vm400_vm3, %v362_v54  ;;  %vm315_vm5 = vcmp.gt.f32.partialorder %v205_v52, 0.0  ;;  %v339_v57 = vmul.f32 0.01, %v205_v52 }
  0xe8   :  { %v220_v58 = vadd.f32 %v813_v56, %v1090_v42  ;;  %v214_v59 = vpop.f32.mrb[5].mxu0  ;;  %v364_v63 = vsel %vm316_vm4, %v210_v50, %v340_v55 }
  0xe9   :  { %v215_v60 = vadd.f32 %v1090_v42, %v214_v59  ;;  %v363_v61 = vsel %vm315_vm5, %v205_v52, %v339_v57 }
  0xea   :  { %v342_v62 = vmul.f32 0.01, %v220_v58  ;;  %860 = vmatprep.mubr.msk.f32.mxu1 %vm400_vm3, %v363_v61  ;;  %vm318_vm6 = vcmp.gt.f32.partialorder %v220_v58, 0.0 }
  0xeb   :  { %vm317_vm7 = vcmp.gt.f32.partialorder %v215_v60, 0.0  ;;  %v341_v0 = vmul.f32 0.01, %v215_v60  ;;  %v816_v1 = vpop.f32.mrb[6].mxu0  ;;  %861 = vmatmul.mubr.msk.f32.vlgmr.msra.gmra.mrb[0].mxu1 %vm400_vm3, %v364_v63 }
  0xec   :  { %v230_v2 = vadd.f32 %v816_v1, %v1090_v42  ;;  %v224_v3 = vpop.f32.mrb[7].mxu0  ;;  %v366_v7 = vsel %vm318_vm6, %v220_v58, %v342_v62 }
  0xed   :  { %v225_v4 = vadd.f32 %v1090_v42, %v224_v3  ;;  %v365_v5 = vsel %vm317_vm7, %v215_v60, %v341_v0 }
  0xee   :  { %v344_v6 = vmul.f32 0.01, %v230_v2  ;;  %863 = vmatprep.mubr.msk.f32.mxu1 %vm400_vm3, %v365_v5  ;;  %vm320_vm8 = vcmp.gt.f32.partialorder %v230_v2, 0.0 }
  0xef   :  { %vm319_vm9 = vcmp.gt.f32.partialorder %v225_v4, 0.0  ;;  %v343_v8 = vmul.f32 0.01, %v225_v4  ;;  %v819_v9 = vpop.f32.mrb[8].mxu0  ;;  %864 = vmatmul.mubr.msk.f32.gmra.mrb[2].mxu1 %vm400_vm3, %v366_v7 }
  0xf0   :  { %v240_v10 = vadd.f32 %v819_v9, %v1090_v42  ;;  %v234_v11 = vpop.f32.mrb[9].mxu0  ;;  %v368_v15 = vsel %vm320_vm8, %v230_v2, %v344_v6 }
  0xf1   :  { %v235_v12 = vadd.f32 %v1090_v42, %v234_v11  ;;  %v367_v13 = vsel %vm319_vm9, %v225_v4, %v343_v8 }
  0xf2   :  { %v346_v14 = vmul.f32 0.01, %v240_v10  ;;  %866 = vmatprep.mubr.msk.f32.mxu1 %vm400_vm3, %v367_v13  ;;  %vm322_vm10 = vcmp.gt.f32.partialorder %v240_v10, 0.0 }
  0xf3   :  { %vm321_vm11 = vcmp.gt.f32.partialorder %v235_v12, 0.0  ;;  %v345_v16 = vmul.f32 0.01, %v235_v12  ;;  %v822_v17 = vpop.f32.mrb[10].mxu0  ;;  %867 = vmatmul.mubr.msk.f32.gmra.mrb[4].mxu1 %vm400_vm3, %v368_v15 }
  0xf4   :  { %v250_v18 = vadd.f32 %v822_v17, %v1090_v42  ;;  %v244_v19 = vpop.f32.mrb[11].mxu0  ;;  %v370_v23 = vsel %vm322_vm10, %v240_v10, %v346_v14 }
  0xf5   :  { %v245_v20 = vadd.f32 %v1090_v42, %v244_v19  ;;  %v369_v21 = vsel %vm321_vm11, %v235_v12, %v345_v16  ;;  %vm658_vm11 = vcmask 130048  }
  0xf6   :  { %v348_v22 = vmul.f32 0.01, %v250_v18  ;;  %869 = vmatprep.mubr.msk.f32.mxu1 %vm400_vm3, %v369_v21  ;;  %vm324_vm12 = vcmp.gt.f32.partialorder %v250_v18, 0.0 }
  0xf7   :  { %vm323_vm13 = vcmp.gt.f32.partialorder %v245_v20, 0.0  ;;  %v347_v24 = vmul.f32 0.01, %v245_v20  ;;  %v825_v25 = vpop.f32.mrb[12].mxu0  ;;  %870 = vmatmul.mubr.msk.f32.gmra.mrb[6].mxu1 %vm400_vm3, %v370_v23 }
  0xf8   :  { %v260_v26 = vadd.f32 %v825_v25, %v1090_v42  ;;  %v254_v27 = vpop.f32.mrb[13].mxu0  ;;  %v372_v31 = vsel %vm324_vm12, %v250_v18, %v348_v22 }
  0xf9   :  { %v255_v28 = vadd.f32 %v1090_v42, %v254_v27  ;;  %v371_v29 = vsel %vm323_vm13, %v245_v20, %v347_v24 }
  0xfa   :  { %v350_v30 = vmul.f32 0.01, %v260_v26  ;;  %872 = vmatprep.mubr.msk.f32.mxu1 %vm400_vm3, %v371_v29  ;;  %vm326_vm14 = vcmp.gt.f32.partialorder %v260_v26, 0.0 }
  0xfb   :  { %vm325_vm15 = vcmp.gt.f32.partialorder %v255_v28, 0.0  ;;  %v349_v32 = vmul.f32 0.01, %v255_v28  ;;  %v828_v33 = vpop.f32.mrb[14].mxu0  ;;  %873 = vmatmul.mubr.msk.f32.gmra.mrb[8].mxu1 %vm400_vm3, %v372_v31 }
  0xfc   :  { %v270_v34 = vadd.f32 %v828_v33, %v1090_v42  ;;  %v264_v35 = vpop.f32.mrb[15].mxu0  ;;  %v374_v39 = vsel %vm326_vm14, %v260_v26, %v350_v30 }
  0xfd   :  { %v265_v36 = vadd.f32 %v1090_v42, %v264_v35  ;;  %v373_v37 = vsel %vm325_vm15, %v255_v28, %v349_v32 }
  0xfe   :  { %v352_v38 = vmul.f32 0.01, %v270_v34  ;;  %875 = vmatprep.mubr.msk.f32.mxu1 %vm400_vm3, %v373_v37  ;;  %vm328_vm0 = vcmp.gt.f32.partialorder %v270_v34, 0.0 }
  0xff   :  { %vm327_vm1 = vcmp.gt.f32.partialorder %v265_v36, 0.0  ;;  %v351_v40 = vmul.f32 0.01, %v265_v36  ;;  %v831_v41 = vpop.f32.mrb[16].mxu0  ;;  %876 = vmatmul.mubr.msk.f32.gmra.mrb[10].mxu1 %vm400_vm3, %v374_v39 }
 0x100   :  { %v280_v43 = vadd.f32 %v831_v41, %v1090_v42  ;;  %v274_v44 = vpop.f32.mrb[17].mxu0  ;;  %v376_v48 = vsel %vm328_vm0, %v270_v34, %v352_v38 }
 0x101   :  { %v275_v45 = vadd.f32 %v1090_v42, %v274_v44  ;;  %v375_v46 = vsel %vm327_vm1, %v265_v36, %v351_v40 }
 0x102   :  { %v354_v47 = vmul.f32 0.01, %v280_v43  ;;  %878 = vmatprep.mubr.msk.f32.mxu1 %vm400_vm3, %v375_v46  ;;  %vm330_vm2 = vcmp.gt.f32.partialorder %v280_v43, 0.0 }
 0x103   :  { %vm329_vm4 = vcmp.gt.f32.partialorder %v275_v45, 0.0  ;;  %v353_v49 = vmul.f32 0.01, %v275_v45  ;;  %v834_v50 = vpop.f32.mrb[18].mxu0  ;;  %879 = vmatmul.mubr.msk.f32.gmra.mrb[12].mxu1 %vm400_vm3, %v376_v48 }
 0x104   :  { %v290_v51 = vadd.f32 %v834_v50, %v1090_v42  ;;  %v284_v52 = vpop.f32.mrb[19].mxu0  ;;  %v378_v56 = vsel %vm330_vm2, %v280_v43, %v354_v47 }
 0x105   :  { %v285_v53 = vadd.f32 %v1090_v42, %v284_v52  ;;  %v377_v54 = vsel %vm329_vm4, %v275_v45, %v353_v49 }
 0x106   :  { %v356_v55 = vmul.f32 0.01, %v290_v51  ;;  %881 = vmatprep.mubr.msk.f32.mxu1 %vm400_vm3, %v377_v54  ;;  %vm332_vm5 = vcmp.gt.f32.partialorder %v290_v51, 0.0 }
 0x107   :  { %vm331_vm6 = vcmp.gt.f32.partialorder %v285_v53, 0.0  ;;  %v355_v57 = vmul.f32 0.01, %v285_v53  ;;  %v837_v58 = vpop.f32.mrb[20].mxu0  ;;  %882 = vmatmul.mubr.msk.f32.gmra.mrb[14].mxu1 %vm400_vm3, %v378_v56 }
 0x108   :  { %v300_v59 = vadd.f32 %v837_v58, %v1090_v42  ;;  %v294_v60 = vpop.f32.mrb[21].mxu0  ;;  %v380_v0 = vsel %vm332_vm5, %v290_v51, %v356_v55 }
 0x109   :  { %v295_v61 = vadd.f32 %v1090_v42, %v294_v60  ;;  %v379_v62 = vsel %vm331_vm6, %v285_v53, %v355_v57 }
 0x10a   :  { %v358_v63 = vmul.f32 0.01, %v300_v59  ;;  %884 = vmatprep.mubr.msk.f32.mxu1 %vm400_vm3, %v379_v62  ;;  %vm334_vm7 = vcmp.gt.f32.partialorder %v300_v59, 0.0 }
 0x10b   :  { %vm333_vm8 = vcmp.gt.f32.partialorder %v295_v61, 0.0  ;;  %v357_v1 = vmul.f32 0.01, %v295_v61  ;;  %v840_v2 = vpop.f32.mrb[22].mxu0  ;;  %885 = vmatmul.mubr.msk.f32.gmra.mrb[16].mxu1 %vm400_vm3, %v380_v0 }
 0x10c   :  { %v310_v3 = vadd.f32 %v840_v2, %v1090_v42  ;;  %v304_v4 = vpop.f32.mrb[23].mxu0  ;;  %v382_v8 = vsel %vm334_vm7, %v300_v59, %v358_v63 }
 0x10d   :  { %v305_v5 = vadd.f32 %v1090_v42, %v304_v4  ;;  %v381_v6 = vsel %vm333_vm8, %v295_v61, %v357_v1  ;;  %v1143_v42 = vld [vmem:[%s1269_s4] ss:$0 sm:$0xff] }
 0x10e   :  { %v360_v7 = vmul.f32 0.01, %v310_v3  ;;  %887 = vmatprep.mubr.msk.f32.mxu1 %vm400_vm3, %v381_v6  ;;  %vm336_vm9 = vcmp.gt.f32.partialorder %v310_v3, 0.0 }
 0x10f   :  { %vm335_vm10 = vcmp.gt.f32.partialorder %v305_v5, 0.0  ;;  %v359_v9 = vmul.f32 0.01, %v305_v5  ;;  %888 = vmatmul.mubr.msk.f32.gmra.mrb[18].mxu1 %vm400_vm3, %v382_v8 }
 0x110   :  { %v384_v11 = vsel %vm336_vm9, %v310_v3, %v360_v7 }
 0x111   :  { %v383_v10 = vsel %vm335_vm10, %v305_v5, %v359_v9 }
 0x112   :  { %890 = vmatprep.mubr.msk.f32.mxu1 %vm400_vm3, %v383_v10 }
 0x113   :  { %891 = vmatmul.mubr.msk.f32.gmra.mrb[20].mxu1 %vm400_vm3, %v384_v11 }
 0x1ba   :  { %v859_v12 = vpop.f32.mrb[24].mxu0 }
 0x1bb   :  { %v545_v13 = vadd.f32 %v859_v12, %v1143_v42  ;;  %v539_v14 = vpop.f32.mrb[25].mxu0 }
 0x1bc   :  { %v540_v15 = vadd.f32 %v1143_v42, %v539_v14 }
 0x1bd   :  { %660 = vst.msk [vmem:[%s1270_s5 + $0x8] sm:$0xff] %vm658_vm11, %v545_v13 }
 0x1be   :  { %659 = vst.msk [vmem:[%s1270_s5] sm:$0xff] %vm658_vm11, %v540_v15  ;;  %v862_v16 = vpop.f32.mrb[0].mxu1 }
 0x1bf   :  { %v555_v17 = vadd.f32 %v862_v16, %v1143_v42  ;;  %v549_v18 = vpop.f32.mrb[1].mxu1 }
 0x1c0   :  { %v550_v19 = vadd.f32 %v1143_v42, %v549_v18 }
 0x1c1   :  { %662 = vst.msk [vmem:[%s1270_s5 + $0x18] sm:$0xff] %vm658_vm11, %v555_v17 }
 0x1c2   :  { %661 = vst.msk [vmem:[%s1270_s5 + $0x10] sm:$0xff] %vm658_vm11, %v550_v19  ;;  %v865_v20 = vpop.f32.mrb[2].mxu1 }
 0x1c3   :  { %v565_v21 = vadd.f32 %v865_v20, %v1143_v42  ;;  %v559_v22 = vpop.f32.mrb[3].mxu1 }
 0x1c4   :  { %v560_v23 = vadd.f32 %v1143_v42, %v559_v22 }
 0x1c5   :  { %664 = vst.msk [vmem:[%s1270_s5 + $0x28] sm:$0xff] %vm658_vm11, %v565_v21 }
 0x1c6   :  { %663 = vst.msk [vmem:[%s1270_s5 + $0x20] sm:$0xff] %vm658_vm11, %v560_v23  ;;  %v868_v24 = vpop.f32.mrb[4].mxu1 }
 0x1c7   :  { %v575_v25 = vadd.f32 %v868_v24, %v1143_v42  ;;  %v569_v26 = vpop.f32.mrb[5].mxu1 }
 0x1c8   :  { %v570_v27 = vadd.f32 %v1143_v42, %v569_v26 }
 0x1c9   :  { %666 = vst.msk [vmem:[%s1270_s5 + $0x38] sm:$0xff] %vm658_vm11, %v575_v25 }
 0x1ca   :  { %665 = vst.msk [vmem:[%s1270_s5 + $0x30] sm:$0xff] %vm658_vm11, %v570_v27  ;;  %v871_v28 = vpop.f32.mrb[6].mxu1 }
 0x1cb   :  { %v585_v29 = vadd.f32 %v871_v28, %v1143_v42  ;;  %v579_v30 = vpop.f32.mrb[7].mxu1 }
 0x1cc   :  { %v580_v31 = vadd.f32 %v1143_v42, %v579_v30 }
 0x1cd   :  { %668 = vst.msk [vmem:[%s1270_s5 + $0x48] sm:$0xff] %vm658_vm11, %v585_v29 }
 0x1ce   :  { %667 = vst.msk [vmem:[%s1270_s5 + $0x40] sm:$0xff] %vm658_vm11, %v580_v31  ;;  %v874_v32 = vpop.f32.mrb[8].mxu1 }
 0x1cf   :  { %v595_v33 = vadd.f32 %v874_v32, %v1143_v42  ;;  %v589_v34 = vpop.f32.mrb[9].mxu1 }
 0x1d0   :  { %v590_v35 = vadd.f32 %v1143_v42, %v589_v34 }
 0x1d1   :  { %670 = vst.msk [vmem:[%s1270_s5 + $0x58] sm:$0xff] %vm658_vm11, %v595_v33 }
 0x1d2   :  { %669 = vst.msk [vmem:[%s1270_s5 + $0x50] sm:$0xff] %vm658_vm11, %v590_v35  ;;  %v877_v36 = vpop.f32.mrb[10].mxu1 }
 0x1d3   :  { %v605_v37 = vadd.f32 %v877_v36, %v1143_v42  ;;  %v599_v38 = vpop.f32.mrb[11].mxu1 }
 0x1d4   :  { %v600_v39 = vadd.f32 %v1143_v42, %v599_v38 }
 0x1d5   :  { %672 = vst.msk [vmem:[%s1270_s5 + $0x68] sm:$0xff] %vm658_vm11, %v605_v37 }
 0x1d6   :  { %671 = vst.msk [vmem:[%s1270_s5 + $0x60] sm:$0xff] %vm658_vm11, %v600_v39  ;;  %v880_v40 = vpop.f32.mrb[12].mxu1 }
 0x1d7   :  { %v615_v41 = vadd.f32 %v880_v40, %v1143_v42  ;;  %v609_v43 = vpop.f32.mrb[13].mxu1 }
 0x1d8   :  { %v610_v44 = vadd.f32 %v1143_v42, %v609_v43 }
 0x1d9   :  { %674 = vst.msk [vmem:[%s1270_s5 + $0x78] sm:$0xff] %vm658_vm11, %v615_v41 }
 0x1da   :  { %673 = vst.msk [vmem:[%s1270_s5 + $0x70] sm:$0xff] %vm658_vm11, %v610_v44  ;;  %v883_v45 = vpop.f32.mrb[14].mxu1 }
 0x1db   :  { %v625_v46 = vadd.f32 %v883_v45, %v1143_v42  ;;  %v619_v47 = vpop.f32.mrb[15].mxu1 }
 0x1dc   :  { %v620_v48 = vadd.f32 %v1143_v42, %v619_v47 }
 0x1dd   :  { %676 = vst.msk [vmem:[%s1270_s5 + $0x88] sm:$0xff] %vm658_vm11, %v625_v46 }
 0x1de   :  { %675 = vst.msk [vmem:[%s1270_s5 + $0x80] sm:$0xff] %vm658_vm11, %v620_v48  ;;  %v886_v49 = vpop.f32.mrb[16].mxu1 }
 0x1df   :  { %v635_v50 = vadd.f32 %v886_v49, %v1143_v42  ;;  %v629_v51 = vpop.f32.mrb[17].mxu1 }
 0x1e0   :  { %v630_v52 = vadd.f32 %v1143_v42, %v629_v51 }
 0x1e1   :  { %678 = vst.msk [vmem:[%s1270_s5 + $0x98] sm:$0xff] %vm658_vm11, %v635_v50 }
 0x1e2   :  { %677 = vst.msk [vmem:[%s1270_s5 + $0x90] sm:$0xff] %vm658_vm11, %v630_v52  ;;  %v889_v53 = vpop.f32.mrb[18].mxu1 }
 0x1e3   :  { %v645_v54 = vadd.f32 %v889_v53, %v1143_v42  ;;  %v639_v55 = vpop.f32.mrb[19].mxu1 }
 0x1e4   :  { %v640_v56 = vadd.f32 %v1143_v42, %v639_v55 }
 0x1e5   :  { %680 = vst.msk [vmem:[%s1270_s5 + $0xa8] sm:$0xff] %vm658_vm11, %v645_v54 }
 0x1e6   :  { %679 = vst.msk [vmem:[%s1270_s5 + $0xa0] sm:$0xff] %vm658_vm11, %v640_v56  ;;  %v892_v57 = vpop.f32.mrb[20].mxu1 }
 0x1e7   :  { %v655_v58 = vadd.f32 %v892_v57, %v1143_v42  ;;  %v649_v59 = vpop.f32.mrb[21].mxu1 }
 0x1e8   :  { %v650_v60 = vadd.f32 %v1143_v42, %v649_v59 }
 0x1e9   :  { %682 = vst.msk [vmem:[%s1270_s5 + $0xb8] sm:$0xff] %vm658_vm11, %v655_v58 }
 0x1ea   :  { %681 = vst.msk [vmem:[%s1270_s5 + $0xb0] sm:$0xff] %vm658_vm11, %v650_v60 }

</bundles_post_ra>
